<compile_context>
chip_gen: v7x
topology: tpu7x:2x2x1
jax: 0.10.0
libtpu: 0.0.40
codegen_flags: <defaults>
</compile_context>

<pallas_src>
import functools

import jax
import jax.numpy as jnp
from jax.experimental import pallas as pl
from jax.experimental.pallas import tpu as pltpu

_SUBLANE = 8  # f32 sublane count; pad batch to a multiple for unmasked vreg rows / stores


def _vae_kernel(*refs, n_enc_blocks, n_dec_blocks, slope):
    """Fully fused VAE forward on a single VMEM-resident block.

    refs = (x, eps,
            [enc_w, enc_b] * n_enc_blocks,
            mu_w, mu_b, sigma_w, sigma_b,
            [dec_w, dec_b] * n_dec_blocks,
            final_w, final_b,
            out)
    """
    it = iter(refs)
    x_ref = next(it)
    eps_ref = next(it)

    def pair():
        w = next(it)
        b = next(it)
        return w, b

    enc = [pair() for _ in range(n_enc_blocks)]
    mu_w, mu_b = pair()
    sg_w, sg_b = pair()
    dec = [pair() for _ in range(n_dec_blocks)]
    fin_w, fin_b = pair()
    o_ref = next(it)

    def linear(h, w_ref, b_ref):
        # MXU matmul with f32 accumulation; bias is (1, Out) -> broadcasts over batch.
        return jnp.dot(h, w_ref[...], preferred_element_type=jnp.float32) + b_ref[...]

    def leaky(h):
        return jnp.where(h >= 0.0, h, slope * h)

    # ---- encoder blocks ----
    h = x_ref[...]
    for w, b in enc:
        h = leaky(linear(h, w, b))

    # ---- latent heads + reparameterization ----
    mu = linear(h, mu_w, mu_b)
    logvar = linear(h, sg_w, sg_b)
    z = eps_ref[...] * jnp.exp(0.5 * logvar) + mu

    # ---- decoder blocks ----
    h = z
    for w, b in dec:
        h = leaky(linear(h, w, b))

    y = linear(h, fin_w, fin_b)
    o_ref[...] = y.astype(o_ref.dtype)


def fused_vae_forward(x, eps, enc_params, mu_p, sigma_p, dec_params, final_p, slope):
    """x: (B, in_channel) f32, eps: (B, latent) f32 -> x_hat: (B, in_channel) f32."""
    B, in_channel = x.shape

    # Pad batch to a multiple of the f32 sublane count (8) -> fully dense vregs,
    # unmasked output stores.  Padded rows are discarded after the call.
    b_pad = ((B + _SUBLANE - 1) // _SUBLANE) * _SUBLANE
    if b_pad != B:
        pad = ((0, b_pad - B), (0, 0))
        x = jnp.pad(x, pad)
        eps = jnp.pad(eps, pad)

    operands = [x, eps]
    for w, b in enc_params:
        operands += [w, b]
    operands += [mu_p[0], mu_p[1], sigma_p[0], sigma_p[1]]
    for w, b in dec_params:
        operands += [w, b]
    operands += [final_p[0], final_p[1]]

    kernel = functools.partial(
        _vae_kernel,
        n_enc_blocks=len(enc_params),
        n_dec_blocks=len(dec_params),
        slope=slope,
    )

    out = pl.pallas_call(
        kernel,
        out_shape=jax.ShapeDtypeStruct((b_pad, in_channel), x.dtype),
        # No grid: single kernel invocation; every operand is a full-array VMEM block
        # (total params ~tens of KiB f32, far below any VMEM limit).
        in_specs=[pl.BlockSpec(memory_space=pltpu.MemorySpace.VMEM)] * len(operands),
        out_specs=pl.BlockSpec(memory_space=pltpu.MemorySpace.VMEM),
    )(*operands)

    return out[:B]


def init_linear_params(key, in_features, out_features):
    """nn.Linear-style init: U(-1/sqrt(in), 1/sqrt(in)).  Weight stored as (in, out),
    bias stored as (1, out) so the kernel needs no reshape."""
    kw, kb = jax.random.split(key)
    bound = 1.0 / jnp.sqrt(jnp.float32(in_features))
    w = jax.random.uniform(kw, (in_features, out_features), jnp.float32,
                           minval=-bound, maxval=bound)
    b = jax.random.uniform(kb, (1, out_features), jnp.float32,
                           minval=-bound, maxval=bound)
    return w, b


class VariationalAutoEncoderPallas:
    """Pallas port of VariationalAutoEncoder (encoder AEBlocks -> mu/sigma -> reparam
    -> decoder AEBlocks -> final Linear), fused into one TPU kernel."""

    def __init__(self, latent_dims, in_channel, encoder_out_channels,
                 decoder_out_channels, leaky_relu_slope=0.2,
                 key=jax.random.PRNGKey(0)):
        self.leaky_relu_slope = leaky_relu_slope
        n_keys = len(encoder_out_channels) + 2 + len(decoder_out_channels) + 1
        keys = iter(jax.random.split(key, n_keys))

        # encoder blocks
        self.enc_params = []
        prev = in_channel
        for oc in encoder_out_channels:
            self.enc_params.append(init_linear_params(next(keys), prev, oc))
            prev = oc
        self.mu_params = init_linear_params(next(keys), prev, latent_dims)
        self.sigma_params = init_linear_params(next(keys), prev, latent_dims)

        # decoder blocks
        self.dec_params = []
        prev = latent_dims
        for oc in decoder_out_channels:
            self.dec_params.append(init_linear_params(next(keys), prev, oc))
            prev = oc
        self.final_params = init_linear_params(next(keys), prev, in_channel)

    def __call__(self, x, eps):
        return fused_vae_forward(
            x, eps,
            self.enc_params, self.mu_params, self.sigma_params,
            self.dec_params, self.final_params,
            self.leaky_relu_slope,
        )


def reference_forward(model, x, eps):
    """Pure-JAX reference (same eps) for correctness check."""
    slope = model.leaky_relu_slope

    def linear(h, p):
        return h @ p[0] + p[1]

    def leaky(h):
        return jnp.where(h >= 0.0, h, slope * h)

    h = x
    for p in model.enc_params:
        h = leaky(linear(h, p))
    mu = linear(h, model.mu_params)
    logvar = linear(h, model.sigma_params)
    z = eps * jnp.exp(0.5 * logvar) + mu
    h = z
    for p in model.dec_params:
        h = leaky(linear(h, p))
    return linear(h, model.final_params)


if __name__ == "__main__":
    # Small, module-consistent shapes:
    #   in_channel=128 (flattened input features), encoder_out_channels=[64, 32],
    #   latent_dims=8, decoder_out_channels=[32, 64], batch=2
    batch = 2
    in_channel = 128
    latent_dims = 8
    encoder_out_channels = [64, 32]
    decoder_out_channels = [32, 64]

    key = jax.random.PRNGKey(0)
    k_param, k_data, k_eps = jax.random.split(key, 3)

    model = VariationalAutoEncoderPallas(
        latent_dims=latent_dims,
        in_channel=in_channel,
        encoder_out_channels=encoder_out_channels,
        decoder_out_channels=decoder_out_channels,
        key=k_param,
    )

    x = jax.random.normal(k_data, (batch, in_channel), jnp.float32)
    eps = jax.random.normal(k_eps, (batch, latent_dims), jnp.float32)

    x_hat = model(x, eps)
    x_hat = jax.block_until_ready(x_hat)

    ref = jax.block_until_ready(reference_forward(model, x, eps))
    assert x_hat.shape == (batch, in_channel), x_hat.shape
    assert jnp.allclose(x_hat, ref, atol=1e-5, rtol=1e-5), "mismatch vs reference"

    print("KERNEL_OK")
</pallas_src>

<mosaic_0001>
module attributes {stable_mosaic.version = 11 : i64} {
  func.func @_vae_kernel(%arg0: memref<8x128xf32, #tpu.memory_space<vmem>>, %arg1: memref<8x8xf32, #tpu.memory_space<vmem>>, %arg2: memref<128x64xf32, #tpu.memory_space<vmem>>, %arg3: memref<1x64xf32, #tpu.memory_space<vmem>>, %arg4: memref<64x32xf32, #tpu.memory_space<vmem>>, %arg5: memref<1x32xf32, #tpu.memory_space<vmem>>, %arg6: memref<32x8xf32, #tpu.memory_space<vmem>>, %arg7: memref<1x8xf32, #tpu.memory_space<vmem>>, %arg8: memref<32x8xf32, #tpu.memory_space<vmem>>, %arg9: memref<1x8xf32, #tpu.memory_space<vmem>>, %arg10: memref<8x32xf32, #tpu.memory_space<vmem>>, %arg11: memref<1x32xf32, #tpu.memory_space<vmem>>, %arg12: memref<32x64xf32, #tpu.memory_space<vmem>>, %arg13: memref<1x64xf32, #tpu.memory_space<vmem>>, %arg14: memref<64x128xf32, #tpu.memory_space<vmem>>, %arg15: memref<1x128xf32, #tpu.memory_space<vmem>>, %arg16: memref<8x128xf32, #tpu.memory_space<vmem>>) attributes {dimension_semantics = [], scalar_prefetch = 0 : i64, scratch_operands = 0 : i64, tpu.core_type = #tpu.core_type<tc>} {
    %c0 = arith.constant 0 : index
    %c0_0 = arith.constant 0 : index
    %0 = vector.load %arg0[%c0, %c0_0] : memref<8x128xf32, #tpu.memory_space<vmem>>, vector<8x128xf32>
    %c0_1 = arith.constant 0 : index
    %c0_2 = arith.constant 0 : index
    %1 = vector.load %arg2[%c0_1, %c0_2] : memref<128x64xf32, #tpu.memory_space<vmem>>, vector<128x64xf32>
    %cst = arith.constant dense<0.000000e+00> : vector<8x64xf32>
    %2 = tpu.matmul %0, %1, %cst {dimension_numbers = #tpu.dot_dimension_numbers<[1], [0], [0], [1], [0, 0, 1, 1], [], []>} : vector<8x128xf32>, vector<128x64xf32>, vector<8x64xf32> -> vector<8x64xf32>
    %c0_3 = arith.constant 0 : index
    %c0_4 = arith.constant 0 : index
    %3 = vector.load %arg3[%c0_3, %c0_4] : memref<1x64xf32, #tpu.memory_space<vmem>>, vector<1x64xf32>
    %4 = vector.broadcast %3 : vector<1x64xf32> to vector<8x64xf32>
    %5 = arith.addf %2, %4 : vector<8x64xf32>
    %cst_5 = arith.constant 0.000000e+00 : f32
    %6 = vector.broadcast %cst_5 : f32 to vector<8x64xf32>
    %7 = arith.cmpf oge, %5, %6 : vector<8x64xf32>
    %cst_6 = arith.constant 2.000000e-01 : f32
    %8 = vector.broadcast %cst_6 : f32 to vector<8x64xf32>
    %9 = arith.mulf %8, %5 : vector<8x64xf32>
    %10 = arith.select %7, %5, %9 : vector<8x64xi1>, vector<8x64xf32>
    %c0_7 = arith.constant 0 : index
    %c0_8 = arith.constant 0 : index
    %11 = vector.load %arg4[%c0_7, %c0_8] : memref<64x32xf32, #tpu.memory_space<vmem>>, vector<64x32xf32>
    %cst_9 = arith.constant dense<0.000000e+00> : vector<8x32xf32>
    %12 = tpu.matmul %10, %11, %cst_9 {dimension_numbers = #tpu.dot_dimension_numbers<[1], [0], [0], [1], [0, 0, 1, 1], [], []>} : vector<8x64xf32>, vector<64x32xf32>, vector<8x32xf32> -> vector<8x32xf32>
    %c0_10 = arith.constant 0 : index
    %c0_11 = arith.constant 0 : index
    %13 = vector.load %arg5[%c0_10, %c0_11] : memref<1x32xf32, #tpu.memory_space<vmem>>, vector<1x32xf32>
    %14 = vector.broadcast %13 : vector<1x32xf32> to vector<8x32xf32>
    %15 = arith.addf %12, %14 : vector<8x32xf32>
    %cst_12 = arith.constant 0.000000e+00 : f32
    %16 = vector.broadcast %cst_12 : f32 to vector<8x32xf32>
    %17 = arith.cmpf oge, %15, %16 : vector<8x32xf32>
    %cst_13 = arith.constant 2.000000e-01 : f32
    %18 = vector.broadcast %cst_13 : f32 to vector<8x32xf32>
    %19 = arith.mulf %18, %15 : vector<8x32xf32>
    %20 = arith.select %17, %15, %19 : vector<8x32xi1>, vector<8x32xf32>
    %c0_14 = arith.constant 0 : index
    %c0_15 = arith.constant 0 : index
    %21 = vector.load %arg6[%c0_14, %c0_15] : memref<32x8xf32, #tpu.memory_space<vmem>>, vector<32x8xf32>
    %cst_16 = arith.constant dense<0.000000e+00> : vector<8x8xf32>
    %22 = tpu.matmul %20, %21, %cst_16 {dimension_numbers = #tpu.dot_dimension_numbers<[1], [0], [0], [1], [0, 0, 1, 1], [], []>} : vector<8x32xf32>, vector<32x8xf32>, vector<8x8xf32> -> vector<8x8xf32>
    %c0_17 = arith.constant 0 : index
    %c0_18 = arith.constant 0 : index
    %23 = vector.load %arg7[%c0_17, %c0_18] : memref<1x8xf32, #tpu.memory_space<vmem>>, vector<1x8xf32>
    %24 = vector.broadcast %23 : vector<1x8xf32> to vector<8x8xf32>
    %25 = arith.addf %22, %24 : vector<8x8xf32>
    %c0_19 = arith.constant 0 : index
    %c0_20 = arith.constant 0 : index
    %26 = vector.load %arg8[%c0_19, %c0_20] : memref<32x8xf32, #tpu.memory_space<vmem>>, vector<32x8xf32>
    %cst_21 = arith.constant dense<0.000000e+00> : vector<8x8xf32>
    %27 = tpu.matmul %20, %26, %cst_21 {dimension_numbers = #tpu.dot_dimension_numbers<[1], [0], [0], [1], [0, 0, 1, 1], [], []>} : vector<8x32xf32>, vector<32x8xf32>, vector<8x8xf32> -> vector<8x8xf32>
    %c0_22 = arith.constant 0 : index
    %c0_23 = arith.constant 0 : index
    %28 = vector.load %arg9[%c0_22, %c0_23] : memref<1x8xf32, #tpu.memory_space<vmem>>, vector<1x8xf32>
    %29 = vector.broadcast %28 : vector<1x8xf32> to vector<8x8xf32>
    %30 = arith.addf %27, %29 : vector<8x8xf32>
    %c0_24 = arith.constant 0 : index
    %c0_25 = arith.constant 0 : index
    %31 = vector.load %arg1[%c0_24, %c0_25] : memref<8x8xf32, #tpu.memory_space<vmem>>, vector<8x8xf32>
    %cst_26 = arith.constant 5.000000e-01 : f32
    %32 = vector.broadcast %cst_26 : f32 to vector<8x8xf32>
    %33 = arith.mulf %32, %30 : vector<8x8xf32>
    %34 = math.exp %33 : vector<8x8xf32>
    %35 = arith.mulf %31, %34 : vector<8x8xf32>
    %36 = arith.addf %35, %25 : vector<8x8xf32>
    %c0_27 = arith.constant 0 : index
    %c0_28 = arith.constant 0 : index
    %37 = vector.load %arg10[%c0_27, %c0_28] : memref<8x32xf32, #tpu.memory_space<vmem>>, vector<8x32xf32>
    %cst_29 = arith.constant dense<0.000000e+00> : vector<8x32xf32>
    %38 = tpu.matmul %36, %37, %cst_29 {dimension_numbers = #tpu.dot_dimension_numbers<[1], [0], [0], [1], [0, 0, 1, 1], [], []>} : vector<8x8xf32>, vector<8x32xf32>, vector<8x32xf32> -> vector<8x32xf32>
    %c0_30 = arith.constant 0 : index
    %c0_31 = arith.constant 0 : index
    %39 = vector.load %arg11[%c0_30, %c0_31] : memref<1x32xf32, #tpu.memory_space<vmem>>, vector<1x32xf32>
    %40 = vector.broadcast %39 : vector<1x32xf32> to vector<8x32xf32>
    %41 = arith.addf %38, %40 : vector<8x32xf32>
    %cst_32 = arith.constant 0.000000e+00 : f32
    %42 = vector.broadcast %cst_32 : f32 to vector<8x32xf32>
    %43 = arith.cmpf oge, %41, %42 : vector<8x32xf32>
    %cst_33 = arith.constant 2.000000e-01 : f32
    %44 = vector.broadcast %cst_33 : f32 to vector<8x32xf32>
    %45 = arith.mulf %44, %41 : vector<8x32xf32>
    %46 = arith.select %43, %41, %45 : vector<8x32xi1>, vector<8x32xf32>
    %c0_34 = arith.constant 0 : index
    %c0_35 = arith.constant 0 : index
    %47 = vector.load %arg12[%c0_34, %c0_35] : memref<32x64xf32, #tpu.memory_space<vmem>>, vector<32x64xf32>
    %cst_36 = arith.constant dense<0.000000e+00> : vector<8x64xf32>
    %48 = tpu.matmul %46, %47, %cst_36 {dimension_numbers = #tpu.dot_dimension_numbers<[1], [0], [0], [1], [0, 0, 1, 1], [], []>} : vector<8x32xf32>, vector<32x64xf32>, vector<8x64xf32> -> vector<8x64xf32>
    %c0_37 = arith.constant 0 : index
    %c0_38 = arith.constant 0 : index
    %49 = vector.load %arg13[%c0_37, %c0_38] : memref<1x64xf32, #tpu.memory_space<vmem>>, vector<1x64xf32>
    %50 = vector.broadcast %49 : vector<1x64xf32> to vector<8x64xf32>
    %51 = arith.addf %48, %50 : vector<8x64xf32>
    %cst_39 = arith.constant 0.000000e+00 : f32
    %52 = vector.broadcast %cst_39 : f32 to vector<8x64xf32>
    %53 = arith.cmpf oge, %51, %52 : vector<8x64xf32>
    %cst_40 = arith.constant 2.000000e-01 : f32
    %54 = vector.broadcast %cst_40 : f32 to vector<8x64xf32>
    %55 = arith.mulf %54, %51 : vector<8x64xf32>
    %56 = arith.select %53, %51, %55 : vector<8x64xi1>, vector<8x64xf32>
    %c0_41 = arith.constant 0 : index
    %c0_42 = arith.constant 0 : index
    %57 = vector.load %arg14[%c0_41, %c0_42] : memref<64x128xf32, #tpu.memory_space<vmem>>, vector<64x128xf32>
    %cst_43 = arith.constant dense<0.000000e+00> : vector<8x128xf32>
    %58 = tpu.matmul %56, %57, %cst_43 {dimension_numbers = #tpu.dot_dimension_numbers<[1], [0], [0], [1], [0, 0, 1, 1], [], []>} : vector<8x64xf32>, vector<64x128xf32>, vector<8x128xf32> -> vector<8x128xf32>
    %c0_44 = arith.constant 0 : index
    %c0_45 = arith.constant 0 : index
    %59 = vector.load %arg15[%c0_44, %c0_45] : memref<1x128xf32, #tpu.memory_space<vmem>>, vector<1x128xf32>
    %60 = vector.broadcast %59 : vector<1x128xf32> to vector<8x128xf32>
    %61 = arith.addf %58, %60 : vector<8x128xf32>
    %c0_46 = arith.constant 0 : index
    %c0_47 = arith.constant 0 : index
    %62 = vector.load %arg16[%c0_46, %c0_47] : memref<8x128xf32, #tpu.memory_space<vmem>>, vector<8x128xf32>
    tpu.vector_store %arg16[%c0_46, %c0_47], %61 {strides = array<i32>} : memref<8x128xf32, #tpu.memory_space<vmem>>, vector<8x128xf32>,
    return
  }
}

</mosaic_0001>

<bundles_post_ra>
// kernel: tpu_custom_call.1
= control target key start
LH: loop header
LB: loop body
LE: loop exit
PB: predicated region body
PF: predicated region fallthrough
CT: control target
= control target key end

     0   :  { %s1267_s0 = inlined_call_operand.vmem [shape: f32[8,128], index: 0, kind: input, shape index: {}]   ;;  %s1268_s1 = inlined_call_operand.vmem [shape: f32[8,8], index: 1, kind: input, shape index: {}]   ;;  %s1269_s2 = inlined_call_operand.vmem [shape: f32[128,64], index: 2, kind: input, shape index: {}]   ;;  %s1270_s3 = inlined_call_operand.vmem [shape: f32[1,64], index: 3, kind: input, shape index: {}]   ;;  %s1271_s4 = inlined_call_operand.vmem [shape: f32[64,32], index: 4, kind: input, shape index: {}]   ;;  %s1272_s5 = inlined_call_operand.vmem [shape: f32[1,32], index: 5, kind: input, shape index: {}]   ;;  %s1273_s6 = inlined_call_operand.vmem [shape: f32[32,8], index: 6, kind: input, shape index: {}]   ;;  %s1274_s7 = inlined_call_operand.vmem [shape: f32[1,8], index: 7, kind: input, shape index: {}]   ;;  %s1275_s8 = inlined_call_operand.vmem [shape: f32[32,8], index: 8, kind: input, shape index: {}]   ;;  %s1276_s9 = inlined_call_operand.vmem [shape: f32[1,8], index: 9, kind: input, shape index: {}]   ;;  %s1277_s10 = inlined_call_operand.vmem [shape: f32[8,32], index: 10, kind: input, shape index: {}]   ;;  %s1278_s11 = inlined_call_operand.vmem [shape: f32[1,32], index: 11, kind: input, shape index: {}]   ;;  %s1279_s12 = inlined_call_operand.vmem [shape: f32[32,64], index: 12, kind: input, shape index: {}]   ;;  %s1280_s13 = inlined_call_operand.vmem [shape: f32[1,64], index: 13, kind: input, shape index: {}]   ;;  %s1281_s14 = inlined_call_operand.vmem [shape: f32[64,128], index: 14, kind: input, shape index: {}]   ;;  %s1282_s15 = inlined_call_operand.vmem [shape: f32[1,128], index: 15, kind: input, shape index: {}]   ;;  %s1283_s16 = inlined_call_operand.hbm [shape: f32[8,128], index: 16, kind: output, shape index: {}]  }
   0x1   :  { %1284 = sst [smem:[#allocation5_spill]] %s1267_s0 }
   0x2   :  { %v55_v0 = vld [vmem:[%s1269_s2] sm:$0xff]  ;;  %v56_v1 = vld [vmem:[%s1269_s2 + $0x8] sm:$0xff]  ;;  %v57_v2 = vld [vmem:[%s1269_s2 + $0x10] sm:$0xff]  ;;  %v962_v3 = vmov 0.0|0.0   ;;  %vm963_vm0 = vmmov 0   ;;  %v964_v6 = vmov 0.0  }
   0x3   :  { %866 = vmatprep.subr.bf16.mxu0 %v962_v3  ;;  %v867_v4 = vpack.c.bf16 %v56_v1, %v55_v0  ;;  %v58_v5 = vld [vmem:[%s1269_s2 + $0x18] sm:$0xff]  ;;  %787 = vmatprep.mubr.msk.f32.mxu0 %vm963_vm0, %v964_v6  ;;  %v59_v8 = vld [vmem:[%s1269_s2 + $0x20] sm:$0xff]  ;;  %v60_v9 = vld [vmem:[%s1269_s2 + $0x28] sm:$0xff] }
   0x4   :  { %890 = vmatprep.subr.bf16.mxu1 %v962_v3  ;;  %806 = vmatprep.mubr.msk.f32.mxu1 %vm963_vm0, %v964_v6  ;;  %v870_v7 = vpack.c.bf16 %v58_v5, %v57_v2  ;;  %v151_v10 = vld [vmem:[%s1271_s4] sm:$0xff]  ;;  %v152_v11 = vld [vmem:[%s1271_s4 + $0x8] sm:$0xff]  ;;  %v153_v12 = vld [vmem:[%s1271_s4 + $0x10] sm:$0xff]  ;;  %v873_v14 = vpack.c.bf16 %v60_v9, %v59_v8 }
   0x5   :  { %868 = vmatpush3.bf16.msra.mxu0 %v867_v4  ;;  %v154_v13 = vld [vmem:[%s1271_s4 + $0x18] sm:$0xff]  ;;  %v891_v15 = vpack.c.bf16 %v152_v11, %v151_v10  ;;  %v61_v16 = vld [vmem:[%s1269_s2 + $0x30] sm:$0xff] }
   0x6   :  { %869 = vmatprep.subr.bf16.mxu0 %v962_v3  ;;  %v62_v17 = vld [vmem:[%s1269_s2 + $0x38] sm:$0xff] }
   0x9   :  { %871 = vmatpush3.bf16.msra.mxu0 %v870_v7 }
   0xa   :  { %872 = vmatprep.subr.bf16.mxu0 %v962_v3 }
   0xb   :  { %21 = vsyncpa [#allocation3], 0  ;;  %892 = vmatpush3.bf16.msra.mxu1 %v891_v15  ;;  %v894_v18 = vpack.c.bf16 %v154_v13, %v153_v12  ;;  %v155_v19 = vld [vmem:[%s1271_s4 + $0x20] sm:$0xff]  ;;  %v156_v20 = vld [vmem:[%s1271_s4 + $0x28] sm:$0xff]  ;;  %v876_v21 = vpack.c.bf16 %v62_v17, %v61_v16  ;;  %s1285_s22 = sld [smem:[#allocation5_spill]]  ;;  %vm166_vm2 = vcmask 523264  }
   0xc   :  { %893 = vmatprep.subr.bf16.mxu1 %v962_v3  ;;  %v63_v22 = vld [vmem:[%s1269_s2 + $0x40] sm:$0xff]  ;;  %v64_v23 = vld [vmem:[%s1269_s2 + $0x48] sm:$0xff]  ;;  %v897_v24 = vpack.c.bf16 %v156_v20, %v155_v19  ;;  %v65_v26 = vld [vmem:[%s1269_s2 + $0x50] sm:$0xff]  ;;  %vm254_vm4 = vcmask 261120   ;;  %vm423_vm5 = vcmask 64512  }
   0xd   :  { %874 = vmatpush3.bf16.msra.mxu0 %v873_v14  ;;  %v879_v25 = vpack.c.bf16 %v64_v23, %v63_v22  ;;  %v66_v27 = vld [vmem:[%s1269_s2 + $0x58] sm:$0xff]  ;;  %v67_v29 = vld [vmem:[%s1269_s2 + $0x60] sm:$0xff]  ;;  %v68_v30 = vld [vmem:[%s1269_s2 + $0x68] sm:$0xff] }
   0xe   :  { %875 = vmatprep.subr.bf16.mxu0 %v962_v3  ;;  %v882_v28 = vpack.c.bf16 %v66_v27, %v65_v26  ;;  %v885_v31 = vpack.c.bf16 %v68_v30, %v67_v29  ;;  %v69_v32 = vld [vmem:[%s1269_s2 + $0x70] sm:$0xff]  ;;  %v70_v33 = vld [vmem:[%s1269_s2 + $0x78] sm:$0xff]  ;;  %v690_v39 = vld [vmem:[%s1270_s3] ss:$0 sm:$0xff] }
   0xf   :  { %895 = vmatpush3.bf16.msra.mxu1 %v894_v18  ;;  %v888_v34 = vpack.c.bf16 %v70_v33, %v69_v32  ;;  %v157_v36 = vld [vmem:[%s1271_s4 + $0x30] sm:$0xff]  ;;  %v158_v37 = vld [vmem:[%s1271_s4 + $0x38] sm:$0xff]  ;;  %v243_v41 = vld [vmem:[%s1273_s6] sm:$0xff] }
  0x10   :  { %896 = vmatprep.subr.bf16.mxu1 %v962_v3  ;;  %v900_v38 = vpack.c.bf16 %v158_v37, %v157_v36  ;;  %v244_v42 = vld [vmem:[%s1273_s6 + $0x8] sm:$0xff]  ;;  %v245_v48 = vld [vmem:[%s1273_s6 + $0x10] sm:$0xff]  ;;  %v246_v49 = vld [vmem:[%s1273_s6 + $0x18] sm:$0xff] }
  0x11   :  { %877 = vmatpush3.bf16.msra.mxu0 %v876_v21  ;;  %v54_v35 = vld [vmem:[%s1285_s22] sm:$0xff]  ;;  %v903_v46 = vpack.c.bf16 %v244_v42, %v243_v41  ;;  %v906_v50 = vpack.c.bf16 %v246_v49, %v245_v48  ;;  %v329_v54 = vld [vmem:[%s1275_s8 + $0x8] sm:$0xff]  ;;  %v330_v59 = vld [vmem:[%s1275_s8 + $0x10] sm:$0xff] }
  0x12   :  { %878 = vmatprep.subr.bf16.mxu0 %v962_v3  ;;  %v691_v51 = vld [vmem:[%s1272_s5] ss:$0 sm:$0xff]  ;;  %v331_v60 = vld [vmem:[%s1275_s8 + $0x18] sm:$0xff]  ;;  %v501_v13 = vld [vmem:[%s1279_s12 + $0x8] sm:$0xff] }
  0x13   :  { %898 = vmatpush3.bf16.msra.mxu1 %v897_v24  ;;  %v328_v53 = vld [vmem:[%s1275_s8] sm:$0xff]  ;;  %v912_v62 = vpack.c.bf16 %v331_v60, %v330_v59  ;;  %v502_v19 = vld [vmem:[%s1279_s12 + $0x10] sm:$0xff]  ;;  %v503_v20 = vld [vmem:[%s1279_s12 + $0x18] sm:$0xff] }
  0x14   :  { %899 = vmatprep.subr.bf16.mxu1 %v962_v3  ;;  %v909_v58 = vpack.c.bf16 %v329_v54, %v328_v53  ;;  %v415_v63 = vld [vmem:[%s1277_s10] sm:$0xff]  ;;  %v918_v21 = vpack.c.bf16 %v503_v20, %v502_v19  ;;  %v589_v23 = vld [vmem:[%s1281_s14 + $0x10] sm:$0xff] }
  0x15   :  { %880 = vmatpush3.bf16.msra.mxu0 %v879_v25  ;;  %v695_v2 = vld [vmem:[%s1276_s9] ss:$0 sm:$0xff]  ;;  %v590_v25 = vld [vmem:[%s1281_s14 + $0x18] sm:$0xff]  ;;  %v593_v36 = vld [vmem:[%s1281_s14 + $0x30] sm:$0xff]  ;;  %s965_s9 = smov [#allocation2]  }
  0x16   :  { %881 = vmatprep.subr.bf16.mxu0 %v962_v3  ;;  %v693_v10 = vld [vmem:[%s1274_s7] ss:$0 sm:$0xff]  ;;  %v924_v26 = vpack.c.bf16 %v590_v25, %v589_v23 }
  0x17   :  { %901 = vmatpush3.bf16.msra.mxu1 %v900_v38  ;;  %v409_v11 = vld [vmem:[%s1268_s1] sm:$0xff] }
  0x18   :  { %902 = vmatprep.subr.bf16.mxu1 %v962_v3  ;;  %v500_v12 = vld [vmem:[%s1279_s12] sm:$0xff] }
  0x19   :  { %883 = vmatpush3.bf16.msra.mxu0 %v882_v28  ;;  %v915_v17 = vpack.c.bf16 %v501_v13, %v500_v12  ;;  %v587_v22 = vld [vmem:[%s1281_s14] sm:$0xff]  ;;  %v592_v28 = vld [vmem:[%s1281_s14 + $0x28] sm:$0xff] }
  0x1a   :  { %884 = vmatprep.subr.bf16.mxu0 %v962_v3  ;;  %v591_v27 = vld [vmem:[%s1281_s14 + $0x20] sm:$0xff] }
  0x1b   :  { %v927_v29 = vpack.c.bf16 %v592_v28, %v591_v27  ;;  %v697_v30 = vld [vmem:[%s1278_s11] ss:$0 sm:$0xff] }
  0x1c   :  { %v699_v38 = vld [vmem:[%s1280_s13] ss:$0 sm:$0xff] }
  0x1d   :  { %886 = vmatpush3.bf16.msra.mxu0 %v885_v31 }
  0x1e   :  { %887 = vmatprep.subr.bf16.mxu0 %v962_v3 }
  0x21   :  { %889 = vmatpush3.bf16.msra.mxu0 %v888_v34 }
  0x22   :  { %920 = vmatprep.subr.bf16.mxu0 %v962_v3 }
  0x24   :  { %788 = vmatmul.mubr.f32.vlgmr.msra.gmra.mrb[0].mxu0 %v54_v35 }
  0x25   :  { %863 = vmatprep.mubr.msk.f32.mxu0 %vm963_vm0, %v964_v6 }
  0xf7   :  { %v144_v40 = vpop.f32.mrb[0].mxu0 }
  0xf8   :  { %v145_v43 = vadd.f32 %v690_v39, %v144_v40  ;;  %v789_v44 = vpop.f32.mrb[1].mxu0 }
  0xf9   :  { %v701_v44 = vld [vmem:[%s1282_s15] ss:$0 sm:$0xff] }
  0xfa   :  { %vm148_vm1 = vcmp.ge.f32.partialorder %v145_v43, 0.0  ;;  %v149_v45 = vmul.f32 0.2, %v145_v43 }
  0xfc   :  { %v150_v47 = vsel %vm148_vm1, %v145_v43, %v149_v45 }
  0xfd   :  { %807 = vmatmul.mubr.msk.f32.vlgmr.msra.gmra.mrb[0].mxu1 %vm166_vm2, %v150_v47 }
  0xfe   :  { %904 = vmatpush3.bf16.msra.mxu1 %v903_v46  ;;  %817 = vmatprep.mubr.msk.f32.mxu1 %vm963_vm0, %v964_v6 }
  0xff   :  { %905 = vmatprep.subr.bf16.mxu1 %v962_v3 }
 0x102   :  { %907 = vmatpush3.bf16.msra.mxu1 %v906_v50 }
 0x103   :  { %908 = vmatprep.subr.bf16.mxu1 %v962_v3 }
 0x1d0   :  { %v236_v52 = vpop.f32.mrb[0].mxu1 }
 0x1d1   :  { %v237_v55 = vadd.f32 %v691_v51, %v236_v52  ;;  %v808_v56 = vpop.f32.mrb[1].mxu1 }
 0x1d3   :  { %vm240_vm3 = vcmp.ge.f32.partialorder %v237_v55, 0.0  ;;  %v241_v57 = vmul.f32 0.2, %v237_v55 }
 0x1d5   :  { %v242_v61 = vsel %vm240_vm3, %v237_v55, %v241_v57 }
 0x1d6   :  { %818 = vmatmul.mubr.msk.f32.vlgmr.msra.gmra.mrb[2].mxu1 %vm254_vm4, %v242_v61 }
 0x1d7   :  { %910 = vmatpush3.bf16.msra.mxu1 %v909_v58  ;;  %828 = vmatprep.mubr.msk.f32.mxu1 %vm963_vm0, %v964_v6 }
 0x1d8   :  { %911 = vmatprep.subr.bf16.mxu1 %v962_v3 }
 0x1db   :  { %913 = vmatpush3.bf16.msra.mxu1 %v912_v62 }
 0x1dc   :  { %831 = vmatprep.subr.mxu1 %v964_v6 }
 0x1de   :  { %829 = vmatmul.mubr.msk.f32.vlgmr.msra.gmra.mrb[4].mxu1 %vm254_vm4, %v242_v61 }
 0x1df   :  { %833 = vmatprep.mubr.msk.f32.mxu1 %vm963_vm0, %v964_v6  ;;  %832 = vmatpush3.msra.mxu1 %v415_v63 }
 0x1e0   :  { %914 = vmatprep.subr.bf16.mxu1 %v962_v3 }
 0x2a9   :  { %v324_v0 = vpop.f32.mrb[2].mxu1 }
 0x2aa   :  { %v819_v1 = vpop.f32.mrb[3].mxu1  ;;  %v325_v15 = vadd.f32 %v693_v10, %v324_v0 }
 0x2b1   :  { %v405_v4 = vpop.f32.mrb[4].mxu1 }
 0x2b2   :  { %v406_v5 = vadd.f32 %v695_v2, %v405_v4  ;;  %v830_v7 = vpop.f32.mrb[5].mxu1 }
 0x2b4   :  { %v410_v8 = vmul.f32 0.5, %v406_v5 }
 0x2b6   :  { %v411_v9 = vmul.f32 1.442695, %v410_v8 }
 0x2b8   :  { %936 = vpow2.f32 %v411_v9 }
 0x2c2   :  { %v937_v14 = vpop.eup %936 }
 0x2c3   :  { %v413_v16 = vmul.f32 %v937_v14, %v409_v11 }
 0x2c5   :  { %v414_v18 = vadd.f32 %v413_v16, %v325_v15 }
 0x2c7   :  { %834 = vmatmul.mubr.msk.f32.vlgmr.msra.gmra.mrb[6].mxu1 %vm423_vm5, %v414_v18 }
 0x2c8   :  { %916 = vmatpush3.bf16.msra.mxu1 %v915_v17  ;;  %844 = vmatprep.mubr.msk.f32.mxu1 %vm963_vm0, %v964_v6  ;;  %v588_v6 = vld [vmem:[%s1281_s14 + $0x8] sm:$0xff] }
 0x2c9   :  { %917 = vmatprep.subr.bf16.mxu1 %v962_v3  ;;  %v921_v24 = vpack.c.bf16 %v588_v6, %v587_v22 }
 0x2cb   :  { %922 = vmatpush3.bf16.msra.mxu0 %v921_v24 }
 0x2cc   :  { %919 = vmatpush3.bf16.msra.mxu1 %v918_v21  ;;  %923 = vmatprep.subr.bf16.mxu0 %v962_v3 }
 0x2cf   :  { %925 = vmatpush3.bf16.msra.mxu0 %v924_v26 }
 0x2d0   :  { %926 = vmatprep.subr.bf16.mxu0 %v962_v3 }
 0x2d3   :  { %928 = vmatpush3.bf16.msra.mxu0 %v927_v29 }
 0x2d4   :  { %929 = vmatprep.subr.bf16.mxu0 %v962_v3  ;;  %v594_v3 = vld [vmem:[%s1281_s14 + $0x38] sm:$0xff]  ;;  %s682_s14 = sshll.u32 %s965_s9, 4  ;;  %s683_s14 = int_to_ptr.vmem [resolvable:$true] %s682_s14 }
 0x2d5   :  { %v930_v37 = vpack.c.bf16 %v594_v3, %v593_v36  ;;  %s938_s13 = scalar_lea.vmem %s683_s14, 128  ;;  %p943_p1 = scmp.lt.s32.totalorder %s683_s14, %s683_s14 }
 0x2d6   :  { %p939_p0 = scmp.ne.s32.totalorder %s683_s14, %s938_s13  ;;  %p944_p2 = scmp.lt.s32.totalorder %s938_s13, %s938_s13 }
 0x2d7   :  { %931 = vmatpush3.bf16.msra.mxu0 %v930_v37 }
 0x2d8   :  { %p945_p3 = por %p944_p2, %p943_p1 }
 0x2da   :  { %p946_p4 = pnand %p945_p3, %p939_p0 }
 0x39a   :  { %v493_v31 = vpop.f32.mrb[6].mxu1 }
 0x39b   :  { %v494_v32 = vadd.f32 %v697_v30, %v493_v31  ;;  %v835_v33 = vpop.f32.mrb[7].mxu1 }
 0x39d   :  { %vm497_vm6 = vcmp.ge.f32.partialorder %v494_v32, 0.0  ;;  %v498_v34 = vmul.f32 0.2, %v494_v32 }
 0x39f   :  { %v499_v35 = vsel %vm497_vm6, %v494_v32, %v498_v34 }
 0x3a0   :  { %845 = vmatmul.mubr.msk.f32.vlgmr.msra.gmra.mrb[8].mxu1 %vm254_vm4, %v499_v35 }
 0x473   :  { %v580_v39 = vpop.f32.mrb[8].mxu1 }
 0x474   :  { %v581_v40 = vadd.f32 %v699_v38, %v580_v39  ;;  %v846_v41 = vpop.f32.mrb[9].mxu1 }
 0x476   :  { %vm584_vm7 = vcmp.ge.f32.partialorder %v581_v40, 0.0  ;;  %v585_v42 = vmul.f32 0.2, %v581_v40 }
 0x478   :  { %v586_v43 = vsel %vm584_vm7, %v581_v40, %v585_v42 }
 0x479   :  { %864 = vmatmul.mubr.msk.f32.vlgmr.msra.gmra.mrb[2].mxu0 %vm166_vm2, %v586_v43 }
 0x54c   :  { %v671_v45 = vpop.f32.mrb[2].mxu0 }
 0x54d   :  { %v672_v46 = vadd.f32 %v701_v44, %v671_v45  ;;  %v865_v47 = vpop.f32.mrb[3].mxu0 }
 0x54f   :  { %675 = vst [vmem:[#allocation2] sm:$0xff] %v672_v46 }
 0x550   :  { %949 = shalt.err (!%p946_p4)
}
 0x551   :  { %s950_s18 = scalar_lea.hbm %s1283_s16, 128 }
 0x552   :  { %p951_p5 = scmp.ne.s32.totalorder %s1283_s16, %s950_s18  ;;  %p954_p6 = scmp.lt.u32.totalorder %s950_s18, %s1283_s16 }
 0x554   :  { %p956_p7 = pnand %p954_p6, %p951_p5 }
 0x556   :  { %959 = shalt.err (!%p956_p7)
}
 0x557   :  { %685 = dma.vmem_to_hbm [thread:$0]  %s683_s14, 128, %s1283_s16, [#allocation3]  }
 0x558   :  { %960 = dma.done.wait [#allocation3], 128  }
 0x559   :  { %961 = vsyncadd [#allocation3], 4294967168 }
 0x55a   :  { %689 = vsyncpa [#allocation3], 1 }

</bundles_post_ra>
